<compile_context>
chip_gen: v6e
topology: v6e:2x2x1
jax: 0.10.0
libtpu: 0.0.40
codegen_flags: <defaults>
</compile_context>

<pallas_src>
import functools
import math

import numpy as np
import jax
import jax.numpy as jnp
from jax.experimental import pallas as pl
from jax.experimental.pallas import tpu as pltpu


def _round_up(x, m):
    return ((x + m - 1) // m) * m


# ------------------------------------------------------------------
# Fused kernel (per batch): QKV(+rot) proj + RoPE + masked attention + out proj
# ------------------------------------------------------------------
def _fused_attn_kernel(x_ref, w_ref, wo_ref, tab_ref, mask_ref, o_ref, attn_ref,
                       *, n_heads, head_dim, ep):
    f32 = jnp.float32
    H, D, EP = n_heads, head_dim, ep

    # Fused projection: x @ [Wq | Wq@R | Wk | Wk@R | Wv]  (one MXU matmul).
    # R = rotate-half signed permutation folded into the weights host-side;
    # 1/sqrt(D) is folded into the Wq blocks.
    x = x_ref[...]                                                   # (S, E)
    qkv = jnp.dot(x, w_ref[...], preferred_element_type=f32)         # (S, 5*EP)

    q     = qkv[:, 0 * EP:1 * EP]
    q_rot = qkv[:, 1 * EP:2 * EP]
    k     = qkv[:, 2 * EP:3 * EP]
    k_rot = qkv[:, 3 * EP:4 * EP]
    v     = qkv[:, 4 * EP:5 * EP]

    cos = tab_ref[:, 0:EP]          # per-head tiled cos, zero in pad lanes
    sin = tab_ref[:, EP:2 * EP]     # per-head tiled sin, zero in pad lanes

    # RoPE over the full lane-dense block (hoisted out of the head loop).
    q = q * cos + q_rot * sin
    k = k * cos + k_rot * sin

    bias = mask_ref[...].astype(f32)                                  # (S, S)

    # Per-head attention.  Per-head results land in a VMEM scratch so a single
    # output-projection matmul runs after the loop.
    # TODO(synk): at production sizes move the head loop to a grid axis with
    #             lane-aligned per-head tiles (avoids these 8-lane slices).
    for h in range(H):
        c0 = h * D
        qh = q[:, c0:c0 + D]                                          # (S, D)
        kh = k[:, c0:c0 + D]
        vh = v[:, c0:c0 + D]

        s = jnp.einsum("qd,kd->qk", qh, kh, preferred_element_type=f32) + bias
        s = s - jnp.max(s, axis=-1, keepdims=True)
        p = jnp.exp(s)
        p = p / jnp.sum(p, axis=-1, keepdims=True)        # exact softmax divide

        attn_ref[:, c0:c0 + D] = jnp.dot(p, vh, preferred_element_type=f32)

    # Single fused output projection; (S, EP) lane-dense store (no vst.msk).
    o_ref[...] = jnp.dot(attn_ref[...], wo_ref[...],
                         preferred_element_type=f32).astype(o_ref.dtype)


# ------------------------------------------------------------------
# Wrapper (host-side glue: weight fusion, RoPE tables, lane padding)
# ------------------------------------------------------------------
def attention_forward(x, wq, wk, wv, wo, cos, sin, mask, n_heads):
    B, S, E = x.shape
    D = E // n_heads
    half = D // 2
    M = B * S
    EP = _round_up(E, 128)                 # lane-dense padded width
    scale = 1.0 / math.sqrt(D)

    def pad_lanes(w):                      # (rows, E) -> (rows, EP)
        return jnp.pad(w, ((0, 0), (0, EP - w.shape[1])))

    # rotate-half signed permutation acting on q/k columns:
    #   (q @ R)[:, c] = -q[:, c+half]  if c is in the first half of its head
    #                   +q[:, c-half]  if c is in the second half
    idx = np.arange(E)
    in_head = idx % D
    src = np.where(in_head < half, idx + half, idx - half)
    sign = np.where(in_head < half, -1.0, 1.0).astype(np.float32)
    R = np.zeros((E, E), dtype=np.float32)
    R[src, idx] = sign
    R = jnp.asarray(R)

    wq_t = wq.T * scale        # fold 1/sqrt(D) into q projection (RoPE is linear)
    wk_t = wk.T
    wv_t = wv.T

    w_big = jnp.concatenate(
        [pad_lanes(wq_t), pad_lanes(wq_t @ R),
         pad_lanes(wk_t), pad_lanes(wk_t @ R),
         pad_lanes(wv_t)], axis=1)                           # (E, 5*EP)
    wo_pad = pad_lanes(wo.T)                                 # (E, EP)

    cos_t = pad_lanes(jnp.tile(cos, (1, n_heads)))           # (S, EP)
    sin_t = pad_lanes(jnp.tile(sin, (1, n_heads)))
    tab = jnp.concatenate([cos_t, sin_t], axis=1)            # (S, 2*EP), one DMA

    x2d = x.reshape(M, E)
    mask_f = mask.astype(jnp.float32)

    kernel = functools.partial(_fused_attn_kernel, n_heads=n_heads,
                               head_dim=D, ep=EP)

    itemsize = 4
    cost = pl.CostEstimate(
        flops=2 * M * E * 5 * EP + 4 * B * n_heads * S * S * D + 2 * M * E * EP,
        transcendentals=B * n_heads * S * S,
        bytes_accessed=itemsize * (M * E + E * 5 * EP + E * EP + S * 2 * EP
                                   + S * S + M * EP),
    )

    out2d = pl.pallas_call(
        kernel,
        grid=(B,),
        in_specs=[
            pl.BlockSpec((S, E), lambda b: (b, 0)),          # x rows of batch b
            pl.BlockSpec((E, 5 * EP), lambda b: (0, 0)),     # fused QKV(+rot) weights
            pl.BlockSpec((E, EP), lambda b: (0, 0)),         # output projection
            pl.BlockSpec((S, 2 * EP), lambda b: (0, 0)),     # cos | sin tables
            pl.BlockSpec((S, S), lambda b: (0, 0)),          # additive mask
        ],
        out_specs=pl.BlockSpec((S, EP), lambda b: (b, 0)),   # lane-dense output
        out_shape=jax.ShapeDtypeStruct((M, EP), x.dtype),
        scratch_shapes=[pltpu.VMEM((S, E), jnp.float32)],
        compiler_params=pltpu.CompilerParams(dimension_semantics=("parallel",)),
        cost_estimate=cost,
    )(x2d, w_big, wo_pad, tab, mask_f)

    return out2d[:, :E].reshape(B, S, E)


# ------------------------------------------------------------------
# Pure-JAX reference (mirrors the PyTorch forward exactly)
# ------------------------------------------------------------------
def reference_forward(x, wq, wk, wv, wo, cos, sin, mask, n_heads):
    B, S, E = x.shape
    D = E // n_heads
    q = (x @ wq.T).reshape(B, S, n_heads, D)
    k = (x @ wk.T).reshape(B, S, n_heads, D)
    v = (x @ wv.T).reshape(B, S, n_heads, D)

    def rope(t):
        c = cos[None, :, None, :]
        s = sin[None, :, None, :]
        h = D // 2
        t1, t2 = t[..., :h], t[..., h:]
        rot = jnp.concatenate([-t2, t1], axis=-1)
        return t * c + rot * s

    q, k = rope(q), rope(k)
    q = q.transpose(0, 2, 1, 3)
    k = k.transpose(0, 2, 1, 3)
    v = v.transpose(0, 2, 1, 3)
    scores = jnp.einsum("bhqd,bhkd->bhqk", q, k) / math.sqrt(D) + mask
    p = jax.nn.softmax(scores.astype(jnp.float32), axis=-1)
    out = jnp.einsum("bhqk,bhkd->bhqd", p, v)
    out = out.transpose(0, 2, 1, 3).reshape(B, S, E)
    return out @ wo.T


# ------------------------------------------------------------------
if __name__ == "__main__":
    B, S, E, H = 2, 8, 32, 4    # max_batch_size=2, max_seq_len=8, emb_dim=32, n_heads=4
    D = E // H

    key = jax.random.PRNGKey(0)
    kx, kq, kk, kv, ko = jax.random.split(key, 5)

    x = jax.random.normal(kx, (B, S, E), dtype=jnp.float32)

    bound = 1.0 / math.sqrt(E)   # nn.Linear default init scale
    wq = jax.random.uniform(kq, (E, E), jnp.float32, -bound, bound)
    wk = jax.random.uniform(kk, (E, E), jnp.float32, -bound, bound)
    wv = jax.random.uniform(kv, (E, E), jnp.float32, -bound, bound)
    wo = jax.random.uniform(ko, (E, E), jnp.float32, -bound, bound)

    # RoPE tables (rotate-half convention), shape (S, D)
    pos = np.arange(S, dtype=np.float32)
    inv_freq = 1.0 / (10000.0 ** (np.arange(0, D, 2, dtype=np.float32) / D))
    ang = np.outer(pos, inv_freq)                                     # (S, D/2)
    cos = jnp.asarray(np.concatenate([np.cos(ang), np.cos(ang)], axis=-1))
    sin = jnp.asarray(np.concatenate([np.sin(ang), np.sin(ang)], axis=-1))

    # standard causal additive mask (the module's `mask` forward argument)
    mask = jnp.where(
        np.arange(S)[:, None] >= np.arange(S)[None, :], 0.0, -1e9
    ).astype(jnp.float32)                                             # (S, S)

    out = attention_forward(x, wq, wk, wv, wo, cos, sin, mask, H)
    out = jax.block_until_ready(out)

    ref = reference_forward(x, wq, wk, wv, wo, cos, sin, mask, H)

    np.testing.assert_allclose(np.asarray(out), np.asarray(ref), atol=1e-3, rtol=1e-3)

    print("KERNEL_OK")
</pallas_src>

<mosaic_0001>
module attributes {stable_mosaic.version = 11 : i64} {
  func.func @_fused_attn_kernel(%arg0: i32, %arg1: memref<8x32xf32, #tpu.memory_space<vmem>>, %arg2: memref<32x640xf32, #tpu.memory_space<vmem>>, %arg3: memref<32x128xf32, #tpu.memory_space<vmem>>, %arg4: memref<8x256xf32, #tpu.memory_space<vmem>>, %arg5: memref<8x8xf32, #tpu.memory_space<vmem>>, %arg6: memref<8x128xf32, #tpu.memory_space<vmem>>, %arg7: memref<8x32xf32, #tpu.memory_space<vmem>>) attributes {dimension_semantics = [#tpu.dimension_semantics<parallel>], iteration_bounds = array<i64: 2>, scalar_prefetch = 0 : i64, scratch_operands = 1 : i64, tpu.core_type = #tpu.core_type<tc>, window_params = [{transform_indices = @transform_0, window_bounds = array<i64: 8, 32>}, {pipeline_mode = #tpu.pipeline_mode<synchronous>, transform_indices = @transform_1, window_bounds = array<i64: 32, 640>}, {pipeline_mode = #tpu.pipeline_mode<synchronous>, transform_indices = @transform_2, window_bounds = array<i64: 32, 128>}, {pipeline_mode = #tpu.pipeline_mode<synchronous>, transform_indices = @transform_3, window_bounds = array<i64: 8, 256>}, {pipeline_mode = #tpu.pipeline_mode<synchronous>, transform_indices = @transform_4, window_bounds = array<i64: 8, 8>}, {transform_indices = @transform_5, window_bounds = array<i64: 8, 128>}]} {
    %c0 = arith.constant 0 : index
    %c0_0 = arith.constant 0 : index
    %0 = vector.load %arg1[%c0, %c0_0] : memref<8x32xf32, #tpu.memory_space<vmem>>, vector<8x32xf32>
    %c0_1 = arith.constant 0 : index
    %c0_2 = arith.constant 0 : index
    %1 = vector.load %arg2[%c0_1, %c0_2] : memref<32x640xf32, #tpu.memory_space<vmem>>, vector<32x640xf32>
    %cst = arith.constant dense<0.000000e+00> : vector<8x640xf32>
    %2 = tpu.matmul %0, %1, %cst {dimension_numbers = #tpu.dot_dimension_numbers<[1], [0], [0], [1], [0, 0, 1, 1], [], []>} : vector<8x32xf32>, vector<32x640xf32>, vector<8x640xf32> -> vector<8x640xf32>
    %3 = vector.extract_strided_slice %2 {offsets = [0, 0], sizes = [8, 128], strides = [1, 1]} : vector<8x640xf32> to vector<8x128xf32>
    %4 = vector.extract_strided_slice %2 {offsets = [0, 128], sizes = [8, 128], strides = [1, 1]} : vector<8x640xf32> to vector<8x128xf32>
    %5 = vector.extract_strided_slice %2 {offsets = [0, 256], sizes = [8, 128], strides = [1, 1]} : vector<8x640xf32> to vector<8x128xf32>
    %6 = vector.extract_strided_slice %2 {offsets = [0, 384], sizes = [8, 128], strides = [1, 1]} : vector<8x640xf32> to vector<8x128xf32>
    %7 = vector.extract_strided_slice %2 {offsets = [0, 512], sizes = [8, 128], strides = [1, 1]} : vector<8x640xf32> to vector<8x128xf32>
    %c0_3 = arith.constant 0 : index
    %c0_4 = arith.constant 0 : index
    %8 = vector.load %arg4[%c0_3, %c0_4] : memref<8x256xf32, #tpu.memory_space<vmem>>, vector<8x128xf32>
    %c0_5 = arith.constant 0 : index
    %c128 = arith.constant 128 : index
    %9 = vector.load %arg4[%c0_5, %c128] : memref<8x256xf32, #tpu.memory_space<vmem>>, vector<8x128xf32>
    %10 = arith.mulf %3, %8 : vector<8x128xf32>
    %11 = arith.mulf %4, %9 : vector<8x128xf32>
    %12 = arith.addf %10, %11 : vector<8x128xf32>
    %13 = arith.mulf %5, %8 : vector<8x128xf32>
    %14 = arith.mulf %6, %9 : vector<8x128xf32>
    %15 = arith.addf %13, %14 : vector<8x128xf32>
    %c0_6 = arith.constant 0 : index
    %c0_7 = arith.constant 0 : index
    %16 = vector.load %arg5[%c0_6, %c0_7] : memref<8x8xf32, #tpu.memory_space<vmem>>, vector<8x8xf32>
    %17 = vector.extract_strided_slice %12 {offsets = [0, 0], sizes = [8, 8], strides = [1, 1]} : vector<8x128xf32> to vector<8x8xf32>
    %18 = vector.extract_strided_slice %15 {offsets = [0, 0], sizes = [8, 8], strides = [1, 1]} : vector<8x128xf32> to vector<8x8xf32>
    %19 = vector.extract_strided_slice %7 {offsets = [0, 0], sizes = [8, 8], strides = [1, 1]} : vector<8x128xf32> to vector<8x8xf32>
    "tpu.trace_start"() <{level = 10 : i32, message = "qd,kd->qk"}> : () -> ()
    %cst_8 = arith.constant dense<0.000000e+00> : vector<8x8xf32>
    %20 = tpu.matmul %17, %18, %cst_8 {dimension_numbers = #tpu.dot_dimension_numbers<[1], [1], [0], [0], [0, 0, 1, 0], [], []>} : vector<8x8xf32>, vector<8x8xf32>, vector<8x8xf32> -> vector<8x8xf32>
    "tpu.trace_stop"() : () -> ()
    %21 = arith.addf %20, %16 : vector<8x8xf32>
    %cst_9 = arith.constant dense<0xFF800000> : vector<8xf32>
    %22 = vector.multi_reduction <maximumf>, %21, %cst_9 [1] : vector<8x8xf32> to vector<8xf32>
    %23 = vector.shape_cast %22 : vector<8xf32> to vector<8x1xf32>
    %24 = vector.broadcast %23 : vector<8x1xf32> to vector<8x8xf32>
    %25 = arith.subf %21, %24 : vector<8x8xf32>
    %26 = math.exp %25 : vector<8x8xf32>
    %cst_10 = arith.constant dense<0.000000e+00> : vector<8xf32>
    %27 = vector.multi_reduction <add>, %26, %cst_10 [1] : vector<8x8xf32> to vector<8xf32>
    %28 = vector.shape_cast %27 : vector<8xf32> to vector<8x1xf32>
    %29 = vector.broadcast %28 : vector<8x1xf32> to vector<8x8xf32>
    %30 = arith.divf %26, %29 : vector<8x8xf32>
    %cst_11 = arith.constant dense<0.000000e+00> : vector<8x8xf32>
    %31 = tpu.matmul %30, %19, %cst_11 {dimension_numbers = #tpu.dot_dimension_numbers<[1], [0], [0], [1], [0, 0, 1, 1], [], []>} : vector<8x8xf32>, vector<8x8xf32>, vector<8x8xf32> -> vector<8x8xf32>
    %c0_12 = arith.constant 0 : index
    %c0_13 = arith.constant 0 : index
    %32 = vector.load %arg7[%c0_12, %c0_13] : memref<8x32xf32, #tpu.memory_space<vmem>>, vector<8x8xf32>
    tpu.vector_store %arg7[%c0_12, %c0_13], %31 {strides = array<i32>} : memref<8x32xf32, #tpu.memory_space<vmem>>, vector<8x8xf32>,
    %33 = vector.extract_strided_slice %12 {offsets = [0, 8], sizes = [8, 8], strides = [1, 1]} : vector<8x128xf32> to vector<8x8xf32>
    %34 = vector.extract_strided_slice %15 {offsets = [0, 8], sizes = [8, 8], strides = [1, 1]} : vector<8x128xf32> to vector<8x8xf32>
    %35 = vector.extract_strided_slice %7 {offsets = [0, 8], sizes = [8, 8], strides = [1, 1]} : vector<8x128xf32> to vector<8x8xf32>
    "tpu.trace_start"() <{level = 10 : i32, message = "qd,kd->qk"}> : () -> ()
    %cst_14 = arith.constant dense<0.000000e+00> : vector<8x8xf32>
    %36 = tpu.matmul %33, %34, %cst_14 {dimension_numbers = #tpu.dot_dimension_numbers<[1], [1], [0], [0], [0, 0, 1, 0], [], []>} : vector<8x8xf32>, vector<8x8xf32>, vector<8x8xf32> -> vector<8x8xf32>
    "tpu.trace_stop"() : () -> ()
    %37 = arith.addf %36, %16 : vector<8x8xf32>
    %cst_15 = arith.constant dense<0xFF800000> : vector<8xf32>
    %38 = vector.multi_reduction <maximumf>, %37, %cst_15 [1] : vector<8x8xf32> to vector<8xf32>
    %39 = vector.shape_cast %38 : vector<8xf32> to vector<8x1xf32>
    %40 = vector.broadcast %39 : vector<8x1xf32> to vector<8x8xf32>
    %41 = arith.subf %37, %40 : vector<8x8xf32>
    %42 = math.exp %41 : vector<8x8xf32>
    %cst_16 = arith.constant dense<0.000000e+00> : vector<8xf32>
    %43 = vector.multi_reduction <add>, %42, %cst_16 [1] : vector<8x8xf32> to vector<8xf32>
    %44 = vector.shape_cast %43 : vector<8xf32> to vector<8x1xf32>
    %45 = vector.broadcast %44 : vector<8x1xf32> to vector<8x8xf32>
    %46 = arith.divf %42, %45 : vector<8x8xf32>
    %cst_17 = arith.constant dense<0.000000e+00> : vector<8x8xf32>
    %47 = tpu.matmul %46, %35, %cst_17 {dimension_numbers = #tpu.dot_dimension_numbers<[1], [0], [0], [1], [0, 0, 1, 1], [], []>} : vector<8x8xf32>, vector<8x8xf32>, vector<8x8xf32> -> vector<8x8xf32>
    %c0_18 = arith.constant 0 : index
    %c8 = arith.constant 8 : index
    %48 = vector.load %arg7[%c0_18, %c8] : memref<8x32xf32, #tpu.memory_space<vmem>>, vector<8x8xf32>
    tpu.vector_store %arg7[%c0_18, %c8], %47 {strides = array<i32>} : memref<8x32xf32, #tpu.memory_space<vmem>>, vector<8x8xf32>,
    %49 = vector.extract_strided_slice %12 {offsets = [0, 16], sizes = [8, 8], strides = [1, 1]} : vector<8x128xf32> to vector<8x8xf32>
    %50 = vector.extract_strided_slice %15 {offsets = [0, 16], sizes = [8, 8], strides = [1, 1]} : vector<8x128xf32> to vector<8x8xf32>
    %51 = vector.extract_strided_slice %7 {offsets = [0, 16], sizes = [8, 8], strides = [1, 1]} : vector<8x128xf32> to vector<8x8xf32>
    "tpu.trace_start"() <{level = 10 : i32, message = "qd,kd->qk"}> : () -> ()
    %cst_19 = arith.constant dense<0.000000e+00> : vector<8x8xf32>
    %52 = tpu.matmul %49, %50, %cst_19 {dimension_numbers = #tpu.dot_dimension_numbers<[1], [1], [0], [0], [0, 0, 1, 0], [], []>} : vector<8x8xf32>, vector<8x8xf32>, vector<8x8xf32> -> vector<8x8xf32>
    "tpu.trace_stop"() : () -> ()
    %53 = arith.addf %52, %16 : vector<8x8xf32>
    %cst_20 = arith.constant dense<0xFF800000> : vector<8xf32>
    %54 = vector.multi_reduction <maximumf>, %53, %cst_20 [1] : vector<8x8xf32> to vector<8xf32>
    %55 = vector.shape_cast %54 : vector<8xf32> to vector<8x1xf32>
    %56 = vector.broadcast %55 : vector<8x1xf32> to vector<8x8xf32>
    %57 = arith.subf %53, %56 : vector<8x8xf32>
    %58 = math.exp %57 : vector<8x8xf32>
    %cst_21 = arith.constant dense<0.000000e+00> : vector<8xf32>
    %59 = vector.multi_reduction <add>, %58, %cst_21 [1] : vector<8x8xf32> to vector<8xf32>
    %60 = vector.shape_cast %59 : vector<8xf32> to vector<8x1xf32>
    %61 = vector.broadcast %60 : vector<8x1xf32> to vector<8x8xf32>
    %62 = arith.divf %58, %61 : vector<8x8xf32>
    %cst_22 = arith.constant dense<0.000000e+00> : vector<8x8xf32>
    %63 = tpu.matmul %62, %51, %cst_22 {dimension_numbers = #tpu.dot_dimension_numbers<[1], [0], [0], [1], [0, 0, 1, 1], [], []>} : vector<8x8xf32>, vector<8x8xf32>, vector<8x8xf32> -> vector<8x8xf32>
    %c0_23 = arith.constant 0 : index
    %c16 = arith.constant 16 : index
    %64 = vector.load %arg7[%c0_23, %c16] : memref<8x32xf32, #tpu.memory_space<vmem>>, vector<8x8xf32>
    tpu.vector_store %arg7[%c0_23, %c16], %63 {strides = array<i32>} : memref<8x32xf32, #tpu.memory_space<vmem>>, vector<8x8xf32>,
    %65 = vector.extract_strided_slice %12 {offsets = [0, 24], sizes = [8, 8], strides = [1, 1]} : vector<8x128xf32> to vector<8x8xf32>
    %66 = vector.extract_strided_slice %15 {offsets = [0, 24], sizes = [8, 8], strides = [1, 1]} : vector<8x128xf32> to vector<8x8xf32>
    %67 = vector.extract_strided_slice %7 {offsets = [0, 24], sizes = [8, 8], strides = [1, 1]} : vector<8x128xf32> to vector<8x8xf32>
    "tpu.trace_start"() <{level = 10 : i32, message = "qd,kd->qk"}> : () -> ()
    %cst_24 = arith.constant dense<0.000000e+00> : vector<8x8xf32>
    %68 = tpu.matmul %65, %66, %cst_24 {dimension_numbers = #tpu.dot_dimension_numbers<[1], [1], [0], [0], [0, 0, 1, 0], [], []>} : vector<8x8xf32>, vector<8x8xf32>, vector<8x8xf32> -> vector<8x8xf32>
    "tpu.trace_stop"() : () -> ()
    %69 = arith.addf %68, %16 : vector<8x8xf32>
    %cst_25 = arith.constant dense<0xFF800000> : vector<8xf32>
    %70 = vector.multi_reduction <maximumf>, %69, %cst_25 [1] : vector<8x8xf32> to vector<8xf32>
    %71 = vector.shape_cast %70 : vector<8xf32> to vector<8x1xf32>
    %72 = vector.broadcast %71 : vector<8x1xf32> to vector<8x8xf32>
    %73 = arith.subf %69, %72 : vector<8x8xf32>
    %74 = math.exp %73 : vector<8x8xf32>
    %cst_26 = arith.constant dense<0.000000e+00> : vector<8xf32>
    %75 = vector.multi_reduction <add>, %74, %cst_26 [1] : vector<8x8xf32> to vector<8xf32>
    %76 = vector.shape_cast %75 : vector<8xf32> to vector<8x1xf32>
    %77 = vector.broadcast %76 : vector<8x1xf32> to vector<8x8xf32>
    %78 = arith.divf %74, %77 : vector<8x8xf32>
    %cst_27 = arith.constant dense<0.000000e+00> : vector<8x8xf32>
    %79 = tpu.matmul %78, %67, %cst_27 {dimension_numbers = #tpu.dot_dimension_numbers<[1], [0], [0], [1], [0, 0, 1, 1], [], []>} : vector<8x8xf32>, vector<8x8xf32>, vector<8x8xf32> -> vector<8x8xf32>
    %c0_28 = arith.constant 0 : index
    %c24 = arith.constant 24 : index
    %80 = vector.load %arg7[%c0_28, %c24] : memref<8x32xf32, #tpu.memory_space<vmem>>, vector<8x8xf32>
    tpu.vector_store %arg7[%c0_28, %c24], %79 {strides = array<i32>} : memref<8x32xf32, #tpu.memory_space<vmem>>, vector<8x8xf32>,
    %c0_29 = arith.constant 0 : index
    %c0_30 = arith.constant 0 : index
    %81 = vector.load %arg7[%c0_29, %c0_30] : memref<8x32xf32, #tpu.memory_space<vmem>>, vector<8x32xf32>
    %c0_31 = arith.constant 0 : index
    %c0_32 = arith.constant 0 : index
    %82 = vector.load %arg3[%c0_31, %c0_32] : memref<32x128xf32, #tpu.memory_space<vmem>>, vector<32x128xf32>
    %cst_33 = arith.constant dense<0.000000e+00> : vector<8x128xf32>
    %83 = tpu.matmul %81, %82, %cst_33 {dimension_numbers = #tpu.dot_dimension_numbers<[1], [0], [0], [1], [0, 0, 1, 1], [], []>} : vector<8x32xf32>, vector<32x128xf32>, vector<8x128xf32> -> vector<8x128xf32>
    %c0_34 = arith.constant 0 : index
    %c0_35 = arith.constant 0 : index
    %84 = vector.load %arg6[%c0_34, %c0_35] : memref<8x128xf32, #tpu.memory_space<vmem>>, vector<8x128xf32>
    tpu.vector_store %arg6[%c0_34, %c0_35], %83 {strides = array<i32>} : memref<8x128xf32, #tpu.memory_space<vmem>>, vector<8x128xf32>,
    return
  }
  func.func @transform_0(%arg0: i32) -> (i32, i32) {
    %c0_i32 = arith.constant 0 : i32
    %c0_i32_0 = arith.constant 0 : i32
    return %arg0, %c0_i32 : i32, i32
  }
  func.func @transform_1(%arg0: i32) -> (i32, i32) {
    %c0_i32 = arith.constant 0 : i32
    %c0_i32_0 = arith.constant 0 : i32
    %c0_i32_1 = arith.constant 0 : i32
    return %c0_i32, %c0_i32_0 : i32, i32
  }
  func.func @transform_2(%arg0: i32) -> (i32, i32) {
    %c0_i32 = arith.constant 0 : i32
    %c0_i32_0 = arith.constant 0 : i32
    %c0_i32_1 = arith.constant 0 : i32
    return %c0_i32, %c0_i32_0 : i32, i32
  }
  func.func @transform_3(%arg0: i32) -> (i32, i32) {
    %c0_i32 = arith.constant 0 : i32
    %c0_i32_0 = arith.constant 0 : i32
    %c0_i32_1 = arith.constant 0 : i32
    return %c0_i32, %c0_i32_0 : i32, i32
  }
  func.func @transform_4(%arg0: i32) -> (i32, i32) {
    %c0_i32 = arith.constant 0 : i32
    %c0_i32_0 = arith.constant 0 : i32
    %c0_i32_1 = arith.constant 0 : i32
    return %c0_i32, %c0_i32_0 : i32, i32
  }
  func.func @transform_5(%arg0: i32) -> (i32, i32) {
    %c0_i32 = arith.constant 0 : i32
    %c0_i32_0 = arith.constant 0 : i32
    return %arg0, %c0_i32 : i32, i32
  }
}

</mosaic_0001>

<bundles_post_ra>
// kernel: tpu_custom_call.1
= control target key start
LH: loop header
LB: loop body
LE: loop exit
PB: predicated region body
PF: predicated region fallthrough
CT: control target
= control target key end

     0   :  { %10 = vsyncpa [#allocation4], 0  ;;  %s2203_s0 = inlined_call_operand.hbm [shape: f32[16,32], index: 0, kind: input, shape index: {}]   ;;  %s2204_s1 = inlined_call_operand.hbm [shape: f32[32,640], index: 1, kind: input, shape index: {}]   ;;  %s2205_s2 = inlined_call_operand.hbm [shape: f32[32,128], index: 2, kind: input, shape index: {}]   ;;  %s2206_s3 = inlined_call_operand.hbm [shape: f32[8,256], index: 3, kind: input, shape index: {}]   ;;  %s2207_s4 = inlined_call_operand.hbm [shape: f32[8,8], index: 4, kind: input, shape index: {}]   ;;  %s2208_s5 = inlined_call_operand.hbm [shape: f32[16,128], index: 5, kind: output, shape index: {}]  }
   0x1   :  { %12 = vsyncpa [#allocation4 + $0x1], 0 }
   0x2   :  { %13 = vsyncpa [#allocation7], 0 }
   0x3   :  { %14 = vsyncpa [#allocation10], 0 }
   0x4   :  { %15 = vsyncpa [#allocation5], 0 }
   0x5   :  { %17 = vsyncpa [#allocation5 + $0x1], 0  ;;  %s1910_s18 = smov 0   ;;  %s1912_s19 = smov 0  }
   0x6   :  { %s1914_s20 = smov 0   ;;  %s1916_s21 = smov 0  }
   0x7 LB: > { %s1862_s22 = smov [#allocation6]   ;;  %s1931_s24 = sadd.s32 4294967295, %s1860_s21   ;;  %s1860_s21 = sphi %s1916_s21, %s2232_s21   ;;  %s1856_s20 = sphi %s1914_s20, %s2231_s20   ;;  %s1852_s19 = sphi %s1912_s19, %s2230_s19   ;;  %s1848_s18 = sphi %s1910_s18, %s2229_s18  }
   0x8   : > { %s176_s23 = sshll.u32 %s1862_s22, 4  ;;  %p1418_p0 = scmp.ge.s32.totalorder %s1860_s21, 1  ;;  %s177_s23 = int_to_ptr.vmem [resolvable:$true] %s176_s23 }
   0x9   : > { %p2209_p1 = scmp.eq.s32.totalorder %s1931_s24, 0  ;;  %p164_p2 = scmp.lt.s32.totalorder %s1860_s21, 3 }
   0xa   : > { %s1863_s26 = smov [#allocation9]   ;;  %s1864_s29 = smov [#allocation8]  }
   0xb   : > { %p1936_p3 = pnand %p1418_p0, %p164_p2  ;;  %s203_s27 = sshll.u32 %s1863_s26, 4  ;;  %s204_s27 = int_to_ptr.vmem [resolvable:$true] %s203_s27 }
   0xc   : > { %s189_s30 = sshll.u32 %s1864_s29, 4  ;;  %s1667_s6 = scalar_lea.vmem %s177_s23, 2560  ;;  %s1949_s30 = int_to_ptr.vmem [resolvable:$true] %s189_s30 }
   0xd   : > { %s2213_s25 = scalar_select %p1936_p3, 1, 0 }
   0xe   : > { %p1561_p5 = pneg %p1936_p3  ;;  %p1668_p8 = scmp.ne.s32.totalorder %s177_s23, %s1667_s6 }
   0xf   : > { %p1675_p11 = scmp.lt.s32.totalorder %s177_s23, %s177_s23  ;;  %p1676_p12 = scmp.lt.s32.totalorder %s1667_s6, %s1667_s6 }
  0x10   : > { %p1945_p6 = pnand %p1561_p5, %p2209_p1 }
  0x11   : > { %p1677_p13 = por %p1676_p12, %p1675_p11 }
  0x12   : > { %p1658_p7 = pneg %p1945_p6 }
  0x14   : > { %p1670_p9 = pnand %p1668_p8, %p1658_p7 }
  0x16   : > { %p1671_p10 = pneg %p1670_p9 }
  0x18   : > { %p1678_p0 = pnand %p1677_p13, %p1671_p10 }
  0x1a   : > { %1681 = shalt.err (!%p1678_p0)
}
  0x1b   : > { %s1865_s7 = smov 640   ;;  %s1866_s8 = smov 40  }
  0x1c   : > { %1564 = dma.hbm_to_vmem [thread:$0]  (!%p1945_p6), %s2204_s1, 2560, %s177_s23, [#allocation7], %s1865_s7, %s1865_s7, %s1866_s8  }
  0x1d   : > { %s1693_s11 = scalar_lea.vmem %s204_s27, 256  ;;  %p1701_p9 = scmp.lt.s32.totalorder %s204_s27, %s204_s27 }
  0x1e   : > { %p1694_p2 = scmp.ne.s32.totalorder %s204_s27, %s1693_s11  ;;  %p1702_p4 = scmp.lt.s32.totalorder %s1693_s11, %s1693_s11 }
  0x20   : > { %p1696_p5 = pnand %p1694_p2, %p1658_p7  ;;  %p1703_p11 = por %p1702_p4, %p1701_p9 }
  0x22   : > { %p1697_p8 = pneg %p1696_p5 }
  0x24   : > { %p1704_p10 = pnand %p1703_p11, %p1697_p8 }
  0x26   : > { %1707 = shalt.err (!%p1704_p10)
}
  0x27   : > { %1570 = dma.hbm_to_vmem [thread:$0]  (!%p1945_p6), %s2206_s3, 256, %s204_s27, [#allocation10]  }
  0x28   : > { %s1719_s14 = scalar_lea.vmem %s1949_s30, 512  ;;  %p1727_p4 = scmp.lt.s32.totalorder %s1949_s30, %s1949_s30 }
  0x29   : > { %p1720_p12 = scmp.ne.s32.totalorder %s1949_s30, %s1719_s14  ;;  %p1728_p2 = scmp.lt.s32.totalorder %s1719_s14, %s1719_s14 }
  0x2b   : > { %p1722_p13 = pnand %p1720_p12, %p1658_p7  ;;  %p1729_p5 = por %p1728_p2, %p1727_p4 }
  0x2d   : > { %p1723_p0 = pneg %p1722_p13 }
  0x2f   : > { %p1730_p8 = pnand %p1729_p5, %p1723_p0 }
  0x31   : > { %1733 = shalt.err (!%p1730_p8)
}
  0x32   : > { %s1867_s15 = smov 128   ;;  %s1868_s16 = smov 8  }
  0x33   : > { %1567 = dma.hbm_to_vmem [thread:$0]  (!%p1945_p6), %s2205_s2, 512, %s1949_s30, [#allocation7], %s1867_s15, %s1867_s15, %s1868_s16  }
  0x34   : > { %s1869_s23 = smov [#allocation11]  }
  0x35   : > { %s214_s26 = sshll.u32 %s1869_s23, 4  ;;  %s215_s26 = int_to_ptr.vmem [resolvable:$true] %s214_s26 }
  0x36   : > { %s1745_s27 = scalar_lea.vmem %s215_s26, 128  ;;  %p1753_p12 = scmp.lt.s32.totalorder %s215_s26, %s215_s26 }
  0x37   : > { %p1746_p9 = scmp.ne.s32.totalorder %s215_s26, %s1745_s27  ;;  %p1754_p13 = scmp.lt.s32.totalorder %s1745_s27, %s1745_s27 }
  0x39   : > { %p1748_p11 = pnand %p1746_p9, %p1658_p7  ;;  %p1755_p0 = por %p1754_p13, %p1753_p12 }
  0x3b   : > { %p1749_p10 = pneg %p1748_p11 }
  0x3d   : > { %p1756_p4 = pnand %p1755_p0, %p1749_p10 }
  0x3f   : > { %1759 = shalt.err (!%p1756_p4)
}
  0x40   : > { %1573 = dma.hbm_to_vmem [thread:$0]  (!%p1945_p6), %s2207_s4, 128, %s215_s26, [#allocation10]  }
  0x41   : > { %s1417_s30 = sadd.s32 4294967294, %s1860_s21   ;;  %s1992_s28 = sadd.s32 1, %s1860_s21  }
  0x42   : > { %s27_s7 = ssub.s32 %s1860_s21, %s1992_s28  ;;  %s30_s8 = sadd.s32 1, %s1856_s20 }
  0x43   : > { %p28_p7 = scmp.eq.s32.totalorder %s27_s7, 0  ;;  %p37_p2 = scmp.ne.s32.totalorder %s1856_s20, %s1852_s19 }
  0x44   : > { %p38_p5 = scmp.eq.s32.totalorder %s1860_s21, 0  ;;  %p43_p8 = scmp.ne.s32.totalorder %s1852_s19, %s1848_s18 }
  0x45   : > { %s2003_s9 = scalar_select %p28_p7, %s1856_s20, %s30_s8  }
  0x46   : > { %p2005_p9 = por %p38_p5, %p37_p2  ;;  %p2011_p6 = por %p2209_p1, %p43_p8 }
  0x47   : > { %p151_p11 = scmp.eq.s32.totalorder %s1931_s24, 1  ;;  %p157_p10 = scmp.eq.s32.totalorder %s1417_s30, 1 }
  0x48   : > { %s2216_s11 = scalar_select %p2011_p6, 1, 0 }
  0x49   : > { %p1586_p12 = scmp.lt.s32.totalorder %s1860_s21, 2  ;;  %s225_s12 = sand.u32 1, %s1856_s20  }
  0x4a   : > { %p2018_p13 = por %p151_p11, %p37_p2  ;;  %p2022_p0 = por %p157_p10, %p43_p8 }
  0x4b   : > { %s1424_s15 = sshll.u32 %s225_s12, 3  ;;  %s1425_s16 = sshll.u32 %s1860_s21, 7 }
  0x4c   : > { %s2217_s13 = scalar_select %p2018_p13, 1, 0 }
  0x4d   : > { %s2218_s14 = scalar_select %p2022_p0, 1, 0 }
  0x4e   : > { %s2030_s23 = scalar_lea.hbm %s2203_s0, %s1425_s16  ;;  %s229_s26 = scalar_lea.vmem [#allocation3], %s1424_s15 }
  0x4f   : > { %s236_s27 = sshll.u32 %s229_s26, 4  ;;  %p2034_p4 = pnand %p1586_p12, %p2005_p9  ;;  %s237_s27 = int_to_ptr.vmem [resolvable:$true] %s236_s27 }
  0x50   : > { %s226_s6 = scalar_lea.sflag [#allocation4], %s225_s12  ;;  %s1760_s30 = scalar_lea.hbm %s2030_s23, 128 }
  0x51   : > { %p1761_p7 = scmp.ne.s32.totalorder %s2030_s23, %s1760_s30  ;;  %p1762_p2 = pneg %p2034_p4 }
  0x52   : > { %s1765_s16 = scalar_lea.hbm %s2203_s0, 256  ;;  %p1766_p11 = scmp.lt.s32.totalorder %s2030_s23, %s2203_s0 }
  0x53   : > { %p1763_p5 = pnand %p1762_p2, %p1761_p7  ;;  %p1767_p9 = scmp.lt.s32.totalorder %s1765_s16, %s1760_s30 }
  0x55   : > { %p1764_p8 = pneg %p1763_p5  ;;  %p1768_p10 = por %p1767_p9, %p1766_p11 }
  0x57   : > { %p1769_p12 = pnand %p1768_p10, %p1764_p8 }
  0x59   : > { %1772 = shalt.err (!%p1769_p12)
}
  0x5a   : > { %s1773_s10 = scalar_lea.vmem %s237_s27, 128  ;;  %s1870_s12 = smov [#allocation3]  }
  0x5b   : > { %p1774_p1 = scmp.ne.s32.totalorder %s237_s27, %s1773_s10  ;;  %s1778_s22 = sshll.u32 %s1870_s12, 4  ;;  %s1779_s22 = int_to_ptr.vmem [resolvable:$false] %s1778_s22 }
  0x5c   : > { %s1780_s26 = scalar_lea.vmem %s1779_s22, 256  ;;  %p1781_p7 = scmp.lt.s32.totalorder %s237_s27, %s1779_s22 }
  0x5d   : > { %p1776_p0 = pnand %p1774_p1, %p1762_p2  ;;  %p1782_p5 = scmp.lt.s32.totalorder %s1780_s26, %s1773_s10 }
  0x5f   : > { %p1777_p13 = pneg %p1776_p0  ;;  %p1783_p6 = por %p1782_p5, %p1781_p7 }
  0x61   : > { %p1784_p3 = pnand %p1783_p6, %p1777_p13 }
  0x63   : > { %1787 = shalt.err (!%p1784_p3)
}
  0x64   : > { %1577 = dma.hbm_to_vmem [thread:$0]  (!%p2034_p4), %s2030_s23, 128, %s237_s27, %s226_s6  }
  0x65   : > { %p2220_p8 = scmp.ne.s32.totalorder %s2213_s25, 0 }
  0x66   : > { %s2055_s30 = sand.u32 (!%p2220_p8), 1, %s1852_s19   ;;  %p2221_p1 = scmp.ne.s32.totalorder (!%p2220_p8), %s2216_s11, 0 }
  0x67   : > { %245 = sbr.rel (%p2220_p8) target bundleno = 1933 (0x78d), region = 40  ;;  %s1427_s7 = sshll.u32 (!%p2220_p8), %s2055_s30, 3 }
  0x68   : > { %s248_s8 = scalar_lea.sflag (!%p2220_p8), [#allocation4], %s2055_s30  ;;  %s2061_s16 = scalar_lea.vmem (!%p2220_p8), [#allocation3], %s1427_s7 }
  0x6c   : > { %1831 = dma.done.wait (%p2221_p1), %s248_s8, 128  }
  0x6d   : > { %1833 = vsyncadd (%p2221_p1), %s248_s8, 4294967168  ;;  %p2222_p3 = scmp.eq.s32.totalorder %s1931_s24, 0 }
  0x6f   : > { %1835 = dma.done.wait (%p2222_p3), [#allocation7], 3072   ;;  %p2223_p6 = pmov %p2222_p3 }
  0x70   : > { %p2224_p13 = pmov %p2222_p3 }
  0x71   : > { %1837 = vsyncadd (%p2223_p6), [#allocation7], 4294964224 }
  0x72   : > { %1839 = dma.done.wait (%p2224_p13), [#allocation10], 384   ;;  %p2225_p0 = pmov %p2222_p3 }
  0x73   : > { %v1871_v0 = vmov 0.0   ;;  %v313_v1 = vld [vmem:[#allocation6 + $0x90] sm:$0xff]  ;;  %v312_v2 = vld [vmem:[#allocation6 + $0x88] sm:$0xff]  ;;  %v311_v3 = vld [vmem:[#allocation6 + $0x80] sm:$0xff]  ;;  %vm315_vm0 = vcmask 261120   ;;  %vm1872_vm1 = vmmov 0  }
  0x74   : > { %1841 = vsyncadd (%p2225_p0), [#allocation10], 4294966912  ;;  %454 = vmatprep.mubr.f32.mxu1 %v1871_v0  ;;  %383 = vmatprep.mubr.f32.mxu0 %v1871_v0  ;;  %v308_v4 = vld [vmem:[#allocation6 + $0x68] sm:$0xff]  ;;  %v310_v5 = vld [vmem:[#allocation6 + $0x78] sm:$0xff]  ;;  %vm540_vm2 = vcmask 64512   ;;  %s1873_s25 = smov 120  }
  0x75   : > { %414 = vmatprep.subr.mxu1 %v313_v1  ;;  %343 = vmatprep.subr.mxu0 %v311_v3  ;;  %v307_v6 = vld [vmem:[#allocation6 + $0x60] sm:$0xff]  ;;  %v306_v7 = vld [vmem:[#allocation6 + $0x58] sm:$0xff]  ;;  %v305_v9 = vld [vmem:[#allocation6 + $0x50] sm:$0xff]  ;;  %s1874_s11 = smov 112   ;;  %s1875_s23 = smov 104   ;;  %vm872_vm3 = vcmask 130112  }
  0x76   : > { %415 = vmatpush1.msra.mxu1 %v312_v2  ;;  %344 = vmatpush1.msra.mxu0 %v310_v5  ;;  %v303_v8 = vld [vmem:[#allocation6 + $0x40] sm:$0xff]  ;;  %v302_v10 = vld [vmem:[#allocation6 + $0x38] sm:$0xff]  ;;  %v301_v11 = vld [vmem:[#allocation6 + $0x30] sm:$0xff]  ;;  %s1876_s27 = smov 8   ;;  %s1877_s29 = smov 16   ;;  %vm1043_vm4 = vcmask 195712  }
  0x77   : > { %416 = vmatprep.subr.mxu1 %v308_v4  ;;  %345 = vmatprep.subr.mxu0 %v306_v7  ;;  %v298_v12 = vld [vmem:[#allocation6 + $0x18] sm:$0xff]  ;;  %v300_v13 = vld [vmem:[#allocation6 + $0x28] sm:$0xff]  ;;  %v297_v15 = vld [vmem:[#allocation6 + $0x10] sm:$0xff]  ;;  %s1878_s6 = smov 24   ;;  %vm1214_vm5 = vcmask 261312   ;;  %s293_s15 = scalar_lea.vmem [#allocation12], %s1427_s7 }
  0x78   : > { %417 = vmatpush1.msra.mxu1 %v307_v6  ;;  %346 = vmatpush1.msra.mxu0 %v305_v9  ;;  %v296_v14 = vld [vmem:[#allocation6 + $0x8] sm:$0xff]  ;;  %v295_v16 = vld [vmem:[#allocation6] sm:$0xff]  ;;  %v294_v17 = vld [vmem:[%s2061_s16] sm:$0xff]  ;;  %s1309_s17 = sshll.u32 %s293_s15, 4  ;;  %s1450_s10 = sshll.u32 %s1931_s24, 7  ;;  %s2157_s17 = int_to_ptr.vmem [resolvable:$true] %s1309_s17 }
  0x79   : > { %418 = vmatprep.subr.mxu1 %v303_v8  ;;  %347 = vmatprep.subr.mxu0 %v301_v11  ;;  %v531_v19 = vld [vmem:[#allocation9] sm:$0xff]  ;;  %v532_v21 = vld [vmem:[#allocation9 + $0x8] sm:$0xff]  ;;  %v314_v30 = vld [vmem:[#allocation6 + $0x98] sm:$0xff]  ;;  %s2162_s26 = scalar_lea.hbm %s2208_s5, %s1450_s10  ;;  %s1296_s8 = scalar_lea.sflag [#allocation5], %s2055_s30 }
  0x7a   : > { %419 = vmatpush1.msra.mxu1 %v302_v10  ;;  %348 = vmatpush1.msra.mxu0 %v300_v13  ;;  %v309_v31 = vld [vmem:[#allocation6 + $0x70] sm:$0xff]  ;;  %v304_v32 = vld [vmem:[#allocation6 + $0x48] sm:$0xff]  ;;  %v299_v33 = vld [vmem:[#allocation6 + $0x20] sm:$0xff]  ;;  %s1788_s16 = scalar_lea.vmem %s2157_s17, 128  ;;  %p2226_p2 = scmp.ne.s32.totalorder %s2217_s13, 0 }
  0x7b   : > { %420 = vmatprep.subr.mxu1 %v298_v12  ;;  %349 = vmatprep.subr.mxu0 %v296_v14  ;;  %v539_v34 = vld [vmem:[#allocation11] sm:$0xff]  ;;  %p1789_p4 = scmp.ne.s32.totalorder %s2157_s17, %s1788_s16  ;;  %s1879_s24 = smov [#allocation12]  }
  0x7c   : > { %421 = vmatpush1.msra.mxu1 %v297_v15  ;;  %350 = vmatpush1.msra.mxu0 %v295_v16  ;;  %s1792_s7 = sshll.u32 %s1879_s24, 4  ;;  %s1793_s7 = int_to_ptr.vmem [resolvable:$false] %s1792_s7 }
  0x7d   : > { %1434 = vmatmul.mubr.msk.f32.vlgmr.msra.gmra.mxu1 %vm315_vm0, %v294_v17  ;;  %1433 = vmatmul.mubr.msk.f32.vlgmr.msra.gmra.mxu0 %vm315_vm0, %v294_v17  ;;  %p1790_p11 = pnand %p1789_p4, %p2226_p2  ;;  %p1795_p10 = scmp.lt.s32.totalorder %s2157_s17, %s1793_s7 }
  0x7e   : > { %1490 = vmatprep.subr.mxu1 %v1871_v0  ;;  %1479 = vmatprep.subr.mxu0 %v1871_v0 }
  0x7f   : > { %1492 = vmatprep.mubr.msk.f32.mxu1 %vm1872_vm1, %v1871_v0  ;;  %1487 = vmatprep.mubr.msk.f32.mxu0 %vm1872_vm1, %v1871_v0  ;;  %p1791_p9 = pneg %p1790_p11 }
  0x80   : > { %1480 = vmatpush3.msra.mxu0 %v314_v30 }
  0x81   : > { %1481 = vmatprep.subr.mxu0 %v1871_v0 }
  0x82   : > { %1482 = vmatpush3.msra.mxu0 %v309_v31 }
  0x83   : > { %1483 = vmatprep.subr.mxu0 %v1871_v0 }
  0x84   : > { %1484 = vmatpush3.msra.mxu0 %v304_v32 }
  0x85   : > { %1485 = vmatprep.subr.mxu0 %v1871_v0 }
  0x86   : > { %1486 = vmatpush3.msra.mxu0 %v299_v33  ;;  %v1220_v33 = vld [vmem:[#allocation8 + $0x18] sm:$0xff] }
  0x87   : > { %1488 = vmatmul.mubr.msk.f32.vlgmr.msra.gmra.mxu0 %vm315_vm0, %v294_v17  ;;  %1510 = vmatprep.subr.mxu0 %v1871_v0 }
  0x88   : > { %1512 = vmatprep.mubr.msk.f32.mxu0 %vm1872_vm1, %v1871_v0 }
 0x13d   : > { %v456_v18 = vpop.f32.mrf.mxu1  ;;  %v385_v20 = vpop.f32.mrf.mxu0 }
 0x13e   : > { %v536_v24 = vmul.f32 %v531_v19, %v456_v18  ;;  %v533_v26 = vmul.f32 %v531_v19, %v385_v20 }
 0x13f   : > { %v458_v22 = vpop.f32.mrf.mxu1  ;;  %v387_v23 = vpop.f32.mrf.mxu0 }
 0x140   : > { %v537_v25 = vmul.f32 %v532_v21, %v458_v22  ;;  %v534_v27 = vmul.f32 %v532_v21, %v387_v23 }
 0x142   : > { %v538_v28 = vadd.f32 %v537_v25, %v536_v24  ;;  %v535_v29 = vadd.f32 %v534_v27, %v533_v26 }
 0x144   : > { %704 = vrot.lane.b32.xlu1 %v538_v28, %s1873_s25  ;;  %1491 = vmatpush3.xpose.msk.msra.mxu1 %vm540_vm2, %v538_v28 }
 0x145   : > { %1495 = vmatprep.subr.mxu1 %v1871_v0 }
 0x147   : > { %1493 = vmatmul.mubr.msk.f32.vlgmr.msra.gmra.mxu1 %vm540_vm2, %v535_v29  ;;  %v2105_v44 = vpop.f32.mrf.mxu0 }
 0x148   : > { %702 = vrot.lane.b32.xlu1 %v535_v29, %s1873_s25  ;;  %1497 = vmatprep.mubr.msk.f32.mxu1 %vm1872_vm1, %v1871_v0 }
 0x149   : > { %1496 = vmatpush3.msra.mxu1 %v2105_v44  ;;  %v1489_v45 = vpop.f32.mrf.mxu0 }
 0x14a   : > { %1500 = vmatprep.subr.mxu1 %v1871_v0 }
 0x14c   : > { %874 = vrot.lane.b32.xlu1 %v535_v29, %s1874_s11 }
 0x150   : > { %1047 = vrot.lane.b32.xlu1 %v538_v28, %s1875_s23 }
 0x154   : > { %1045 = vrot.lane.b32.xlu1 %v535_v29, %s1875_s23 }
 0x1b6   : > { %v705_v46 = vpop.permute.xlu1 %704 }
 0x1ba   : > { %v703_v47 = vpop.permute.xlu1 %702 }
 0x1be   : > { %v875_v48 = vpop.permute.xlu1 %874 }
 0x1c2   : > { %v1048_v51 = vpop.permute.xlu1 %1047 }
 0x1c6   : > { %v1046_v52 = vpop.permute.xlu1 %1045 }
 0x207   : > { %v613_v35 = vpop.f32.mrf.mxu1 }
 0x208   : > { %v614_v36 = vadd.f32 %v613_v35, %v539_v34  ;;  %v1218_v35 = vld [vmem:[#allocation8 + $0x8] sm:$0xff] }
 0x209   : > { %v1494_v37 = vpop.f32.mrf.mxu1 }
 0x20a   : > { %v617_v38 = vsel %vm540_vm2, %v614_v36, -inf  ;;  %v1217_v37 = vld [vmem:[#allocation8] sm:$0xff] }
 0x20b   : > { %618 = vmax.xlane.f32.xlu0 %v617_v38 }
 0x294   : > { %v619_v39 = vpop.xlane.xlu0 %618 }
 0x295   : > { %v620_v40 = vsub.f32 %v614_v36, %v619_v39 }
 0x297   : > { %v621_v41 = vmul.f32 1.442695, %v620_v40 }
 0x299   : > { %1640 = vpow2.f32 %v621_v41 }
 0x2a6   : > { %v1641_v42 = vpop.eup %1640 }
 0x2a7   : > { %v623_v43 = vsel %vm540_vm2, %v1641_v42, 0.0 }
 0x2a8   : > { %624 = vadd.xlane.f32.xlu0 %v623_v43 }
 0x2be   : > { %876 = vrot.lane.b32.xlu0 %v538_v28, %s1874_s11 }
 0x331   : > { %v625_v49 = vpop.xlane.xlu0 %624 }
 0x332   : > { %1642 = vrcp.f32 %v625_v49 }
 0x335   : > { %v877_v50 = vpop.permute.xlu0 %876 }
 0x336   : > { %1511 = vmatpush3.xpose.msk.msra.mxu0 %vm540_vm2, %v877_v50 }
 0x337   : > { %1520 = vmatprep.subr.mxu0 %v1871_v0 }
 0x339   : > { %1513 = vmatmul.mubr.msk.f32.vlgmr.msra.gmra.mxu0 %vm540_vm2, %v875_v48 }
 0x33a   : > { %1521 = vmatpush3.xpose.msk.msra.mxu0 %vm540_vm2, %v1048_v51  ;;  %1522 = vmatprep.mubr.msk.f32.mxu0 %vm1872_vm1, %v1871_v0 }
 0x33b   : > { %1530 = vmatprep.subr.mxu0 %v1871_v0 }
 0x33d   : > { %1523 = vmatmul.mubr.msk.f32.vlgmr.msra.gmra.mxu0 %vm540_vm2, %v1046_v52 }
 0x33e   : > { %1538 = vmatprep.mubr.msk.f32.mxu0 %vm1872_vm1, %v1871_v0  ;;  %1531 = vmatpush3.msra.mxu0 %v1220_v33 }
 0x33f   : > { %v1643_v53 = vpop.eup %1642  ;;  %1532 = vmatprep.subr.mxu0 %v1871_v0 }
 0x340   : > { %v627_v54 = vmul.f32 %v1643_v53, %v1641_v42 }
 0x342   : > { %1498 = vmatmul.mubr.msk.f32.vlgmr.msra.gmra.mxu1 %vm540_vm2, %v627_v54 }
 0x343   : > { %1501 = vmatpush3.xpose.msk.msra.mxu1 %vm540_vm2, %v705_v46  ;;  %1502 = vmatprep.mubr.msk.f32.mxu1 %vm1872_vm1, %v1871_v0 }
 0x344   : > { %1505 = vmatprep.subr.mxu1 %v1871_v0 }
 0x346   : > { %1503 = vmatmul.mubr.msk.f32.vlgmr.msra.gmra.mxu1 %vm540_vm2, %v703_v47 }
 0x347   : > { %1507 = vmatprep.mubr.msk.f32.mxu1 %vm1872_vm1, %v1871_v0 }
 0x3f9   : > { %v948_v55 = vpop.f32.mrf.mxu0 }
 0x3fa   : > { %v949_v56 = vadd.f32 %v948_v55, %v539_v34 }
 0x3fb   : > { %v1514_v57 = vpop.f32.mrf.mxu0 }
 0x3fc   : > { %v952_v58 = vsel %vm540_vm2, %v949_v56, -inf }
 0x3fd   : > { %953 = vmax.xlane.f32.xlu0 %v952_v58  ;;  %v1119_v59 = vpop.f32.mrf.mxu0 }
 0x3fe   : > { %v1120_v3 = vadd.f32 %v1119_v59, %v539_v34 }
 0x3ff   : > { %v1524_v60 = vpop.f32.mrf.mxu0 }
 0x400   : > { %v1123_v5 = vsel %vm540_vm2, %v1120_v3, -inf }
 0x402   : > { %v697_v61 = vpop.f32.mrf.mxu1 }
 0x403   : > { %701 = vst.msk [vmem:[#allocation2] sm:$0xff] %vm540_vm2, %v697_v61 }
 0x404   : > { %v1499_v62 = vpop.f32.mrf.mxu1 }
 0x406   : > { %v776_v63 = vpop.f32.mrf.mxu1 }
 0x407   : > { %v777_v1 = vadd.f32 %v776_v63, %v539_v34  ;;  %v1219_v34 = vld [vmem:[#allocation8 + $0x10] sm:$0xff] }
 0x408   : > { %v1504_v2 = vpop.f32.mrf.mxu1  ;;  %1533 = vmatpush3.msra.mxu0 %v1219_v34 }
 0x409   : > { %v780_v4 = vsel %vm540_vm2, %v777_v1, -inf  ;;  %1534 = vmatprep.subr.mxu0 %v1871_v0 }
 0x40a   : > { %781 = vmax.xlane.f32.xlu1 %v780_v4  ;;  %1535 = vmatpush3.msra.mxu0 %v1218_v35 }
 0x40b   : > { %1536 = vmatprep.subr.mxu0 %v1871_v0 }
 0x40c   : > { %1537 = vmatpush3.msra.mxu0 %v1217_v37 }
 0x40e   : > { %1124 = vmax.xlane.f32.xlu1 %v1123_v5 }
 0x486   : > { %v954_v6 = vpop.xlane.xlu0 %953 }
 0x487   : > { %v955_v7 = vsub.f32 %v949_v56, %v954_v6 }
 0x489   : > { %v956_v8 = vmul.f32 1.442695, %v955_v7 }
 0x48b   : > { %1644 = vpow2.f32 %v956_v8 }
 0x493   : > { %v782_v9 = vpop.xlane.xlu1 %781 }
 0x494   : > { %v783_v17 = vsub.f32 %v777_v1, %v782_v9 }
 0x496   : > { %v784_v18 = vmul.f32 1.442695, %v783_v17 }
 0x497   : > { %v1125_v10 = vpop.xlane.xlu1 %1124 }
 0x498   : > { %v1645_v11 = vpop.eup %1644  ;;  %v1126_v12 = vsub.f32 %v1120_v3, %v1125_v10 }
 0x499   : > { %v958_v13 = vsel %vm540_vm2, %v1645_v11, 0.0 }
 0x49a   : > { %v1127_v14 = vmul.f32 1.442695, %v1126_v12  ;;  %959 = vadd.xlane.f32.xlu0 %v958_v13 }
 0x49c   : > { %1646 = vpow2.f32 %v1127_v14 }
 0x49d   : > { %1648 = vpow2.f32 %v784_v18 }
 0x4a9   : > { %v1647_v15 = vpop.eup %1646 }
 0x4aa   : > { %v1129_v16 = vsel %vm540_vm2, %v1647_v15, 0.0  ;;  %v1649_v19 = vpop.eup %1648 }
 0x4ab   : > { %1130 = vadd.xlane.f32.xlu1 %v1129_v16  ;;  %v786_v20 = vsel %vm540_vm2, %v1649_v19, 0.0 }
 0x4b0   : > { %792 = vrot.lane.b32.xlu0 %v2105_v44, %s1873_s25  ;;  %s1794_s25 = scalar_lea.vmem %s1793_s7, 256 }
 0x4b1   : > { %p1796_p12 = scmp.lt.s32.totalorder %s1794_s25, %s1788_s16 }
 0x4b3   : > { %p1797_p7 = por %p1796_p12, %p1795_p10 }
 0x4b5   : > { %p1798_p5 = pnand %p1797_p7, %p1791_p9 }
 0x4bc   : > { %963 = vrot.lane.b32.xlu1 %v2105_v44, %s1874_s11 }
 0x4e0   : > { %787 = vadd.xlane.f32.xlu1 %v786_v20 }
 0x4f1   : > { %1134 = vrot.lane.b32.xlu1 %v2105_v44, %s1875_s23 }
 0x523   : > { %v960_v21 = vpop.xlane.xlu0 %959 }
 0x527   : > { %v793_v22 = vpop.permute.xlu0 %792 }
 0x528   : > { %1506 = vmatpush3.msra.mxu1 %v793_v22 }
 0x529   : > { %1515 = vmatprep.subr.mxu1 %v1871_v0 }
 0x534   : > { %v1131_v23 = vpop.xlane.xlu1 %1130 }
 0x538   : > { %v964_v24 = vpop.permute.xlu1 %963 }
 0x569   : > { %v788_v25 = vpop.xlane.xlu1 %787 }
 0x56a   : > { %1650 = vrcp.f32 %v788_v25 }
 0x56b   : > { %1652 = vrcp.f32 %v960_v21 }
 0x56c   : > { %1654 = vrcp.f32 %v1131_v23 }
 0x56d   : > { %v1135_v31 = vpop.permute.xlu1 %1134 }
 0x577   : > { %v1651_v26 = vpop.eup %1650 }
 0x578   : > { %v790_v27 = vmul.f32 %v1651_v26, %v1649_v19  ;;  %v1653_v28 = vpop.eup %1652 }
 0x579   : > { %v962_v29 = vmul.f32 %v1653_v28, %v1645_v11  ;;  %v1655_v30 = vpop.eup %1654 }
 0x57a   : > { %1508 = vmatmul.mubr.msk.f32.vlgmr.msra.gmra.mxu1 %vm540_vm2, %v790_v27  ;;  %v1133_v32 = vmul.f32 %v1655_v30, %v1647_v15 }
 0x57b   : > { %1516 = vmatpush3.msra.mxu1 %v964_v24  ;;  %1517 = vmatprep.mubr.msk.f32.mxu1 %vm1872_vm1, %v1871_v0 }
 0x57c   : > { %1525 = vmatprep.subr.mxu1 %v1871_v0 }
 0x57e   : > { %1518 = vmatmul.mubr.msk.f32.vlgmr.msra.gmra.mxu1 %vm540_vm2, %v962_v29 }
 0x57f   : > { %1526 = vmatpush3.msra.mxu1 %v1135_v31  ;;  %1527 = vmatprep.mubr.msk.f32.mxu1 %vm1872_vm1, %v1871_v0 }
 0x582   : > { %1528 = vmatmul.mubr.msk.f32.vlgmr.msra.gmra.mxu1 %vm540_vm2, %v1133_v32 }
 0x63a   : > { %v864_v36 = vpop.f32.mrf.mxu1 }
 0x63b   : > { %869 = vrot.lane.b32.xlu0 %v864_v36, %s1876_s27 }
 0x63c   : > { %v1509_v38 = vpop.f32.mrf.mxu1 }
 0x63e   : > { %v1035_v39 = vpop.f32.mrf.mxu1 }
 0x63f   : > { %1040 = vrot.lane.b32.xlu1 %v1035_v39, %s1877_s29 }
 0x640   : > { %v1519_v40 = vpop.f32.mrf.mxu1 }
 0x642   : > { %v1206_v41 = vpop.f32.mrf.mxu1 }
 0x643   : > { %1211 = vrot.lane.b32.xlu0 %v1206_v41, %s1878_s6 }
 0x644   : > { %v1529_v42 = vpop.f32.mrf.mxu1 }
 0x6ad   : > { %v870_v43 = vpop.permute.xlu0 %869 }
 0x6ae   : > { %873 = vst.msk [vmem:[#allocation2] sm:$0xff] %vm872_vm3, %v870_v43 }
 0x6b1   : > { %v1041_v44 = vpop.permute.xlu1 %1040 }
 0x6b2   : > { %1044 = vst.msk [vmem:[#allocation2] sm:$0xff] %vm1043_vm4, %v1041_v44 }
 0x6b5   : > { %v1212_v0 = vpop.permute.xlu0 %1211 }
 0x6b6   : > { %1215 = vst.msk [vmem:[#allocation2] sm:$0xff] %vm1214_vm5, %v1212_v0 }
 0x6bd   : > { %v1216_v45 = vld [vmem:[#allocation2] sm:$0xff] }
 0x6be   : > { %1539 = vmatmul.mubr.msk.f32.vlgmr.msra.gmra.mxu0 %vm315_vm0, %v1216_v45 }
 0x77e   : > { %v1290_v46 = vpop.f32.mrf.mxu0 }
 0x77f   : > { %1294 = vst [vmem:[%s293_s15] sm:$0xff] %v1290_v46 }
 0x780   : > { %v1540_v47 = vpop.f32.mrf.mxu0 }
 0x781   : > { %1801 = shalt.err (!%p1798_p5)
}
 0x782   : > { %s1802_s11 = scalar_lea.hbm %s2162_s26, 128  ;;  %s1806_s27 = scalar_lea.hbm %s2208_s5, 256 }
 0x783   : > { %p1803_p8 = scmp.ne.s32.totalorder %s2162_s26, %s1802_s11  ;;  %p1807_p6 = scmp.lt.s32.totalorder %s2162_s26, %s2208_s5 }
 0x784   : > { %p1808_p13 = scmp.lt.s32.totalorder %s1806_s27, %s1802_s11 }
 0x785   : > { %p1804_p1 = pnand %p1803_p8, %p2226_p2 }
 0x786   : > { %p1809_p0 = por %p1808_p13, %p1807_p6 }
 0x787   : > { %p1805_p3 = pneg %p1804_p1 }
 0x789   : > { %p1810_p4 = pnand %p1809_p0, %p1805_p3 }
 0x78b   : > { %1813 = shalt.err (!%p1810_p4)
}
 0x78c   : > { %1559 = dma.vmem_to_hbm [thread:$0]  (%p2226_p2), %s2157_s17, 128, %s2162_s26, %s1296_s8  }
 0x78d PF: > { %s1321_s15 = sand.u32 1, %s1848_s18   ;;  %p2227_p11 = scmp.ne.s32.totalorder %s2218_s14, 0 }
 0x78e   : > { %p2228_p9 = scmp.ge.s32.totalorder %s1860_s21, 2  ;;  %s1322_s10 = scalar_lea.sflag [#allocation5], %s1321_s15 }
 0x790   : > { %p1579_p10 = pnand %p2228_p9, %p2227_p11 }
 0x792   : > { %p1580_p12 = pneg %p1579_p10 }
 0x794   : > { %1843 = dma.done.wait (%p1580_p12), %s1322_s10, 128  }
 0x795   : > { %1845 = vsyncadd (%p1580_p12), %s1322_s10, 4294967168  ;;  %p20_p7 = scmp.ge.s32.totalorder %s1992_s28, 4   ;;  %s2229_s18 = smov %s1852_s19 }
 0x796   : > { %s2230_s19 = smov %s1856_s20  ;;  %s2231_s20 = smov %s2003_s9 }
 0x797   : > { %s2232_s21 = smov %s1992_s28  ;;  %22 = sbr.rel (!%p20_p7) target bundleno = 7 (0x7), region = 101 }
 0x79c   :  { %1327 = vsyncpa [#allocation4], 1 }
 0x79d   :  { %1329 = vsyncpa [#allocation4 + $0x1], 1 }
 0x79e   :  { %1330 = vsyncpa [#allocation7], 1 }
 0x79f   :  { %1331 = vsyncpa [#allocation10], 1 }
 0x7a0   :  { %1332 = vsyncpa [#allocation5], 1 }
 0x7a1   :  { %1334 = vsyncpa [#allocation5 + $0x1], 1 }

</bundles_post_ra>
